<compile_context>
chip_gen: v7x
topology: tpu7x:2x2x1
jax: 0.10.0
libtpu: 0.0.40
codegen_flags: <defaults>
</compile_context>

<pallas_src>
import functools
import math

import jax
import jax.numpy as jnp
from jax.experimental import pallas as pl
from jax.experimental.pallas import tpu as pltpu

LN_EPS = 1e-5  # PyTorch nn.LayerNorm default


def _layer_norm_f32(x, gamma, beta):
    """LayerNorm over the last dim; x/gamma/beta are f32."""
    mu = jnp.mean(x, axis=-1, keepdims=True)
    var = jnp.mean((x - mu) ** 2, axis=-1, keepdims=True)
    return (x - mu) * jax.lax.rsqrt(var + LN_EPS) * gamma + beta


def encoder_layer_kernel(xq_ref, xkv_ref, wff_ref, bff_ref, g1_ref, b1_ref,
                         g2_ref, b2_ref, o_ref, m_sc, l_sc, acc_sc, *,
                         mxu_dtype):
    # xq_ref : (tq,  D) query tile           (batch dim squeezed away)
    # xkv_ref: (tkv, D) key/value chunk      (batch dim squeezed away)
    # wff_ref: (D, D)  PyTorch Linear layout (out_features, in_features)
    # vectors: (1, D)  f32
    # scratch: m_sc/l_sc (tq, 1) f32, acc_sc (tq, D) f32
    kv = pl.program_id(2)

    @pl.when(kv == 0)
    def _init():
        m_sc[...] = jnp.full_like(m_sc, -jnp.inf)
        l_sc[...] = jnp.zeros_like(l_sc)
        acc_sc[...] = jnp.zeros_like(acc_sc)

    x_q = xq_ref[...]                       # (tq, D)
    x_kv = xkv_ref[...]                     # (tkv, D)
    d_model = x_q.shape[-1]
    scale = 1.0 / math.sqrt(d_model)

    # Fold the 1/sqrt(d_model) scale into the (small) query operand.
    kv_m = x_kv.astype(mxu_dtype)
    q_m = (x_q.astype(jnp.float32) * scale).astype(mxu_dtype)

    # scores[q, k] = <q_m[q, :], x_kv[k, :]> — contraction on the last dim of
    # both operands: no transpose, MXU-native, f32 accumulation.
    s = jax.lax.dot_general(
        q_m, kv_m,
        dimension_numbers=(((1,), (1,)), ((), ())),
        preferred_element_type=jnp.float32)                  # (tq, tkv) f32

    # Online softmax update.
    m_prev = m_sc[...]
    m_new = jnp.maximum(m_prev, jnp.max(s, axis=-1, keepdims=True))
    alpha = jnp.exp(m_prev - m_new)
    p = jnp.exp(s - m_new)                                   # (tq, tkv) f32
    l_sc[...] = alpha * l_sc[...] + jnp.sum(p, axis=-1, keepdims=True)
    acc_sc[...] = alpha * acc_sc[...] + jax.lax.dot_general(
        p.astype(mxu_dtype), kv_m,
        dimension_numbers=(((1,), (0,)), ((), ())),
        preferred_element_type=jnp.float32)                  # (tq, D) f32
    m_sc[...] = m_new

    # Epilogue once per (b, q) tile: residuals, LayerNorms, feed-forward.
    @pl.when(kv == pl.num_programs(2) - 1)
    def _epilogue():
        attn = acc_sc[...] * pl.reciprocal(l_sc[...], approx=True)
        x1 = x_q.astype(jnp.float32) + attn                  # residual (dropout = identity)
        x1 = _layer_norm_f32(x1, g1_ref[0], b1_ref[0])

        # feed-forward: x1 @ W^T + b, contracting last dims (PyTorch (out, in)
        # layout) — again transpose-free.
        ff = jax.lax.dot_general(
            x1.astype(mxu_dtype), wff_ref[...].astype(mxu_dtype),
            dimension_numbers=(((1,), (1,)), ((), ())),
            preferred_element_type=jnp.float32) + bff_ref[0]  # (tq, D) f32

        x2 = _layer_norm_f32(x1 + ff, g2_ref[0], b2_ref[0])
        o_ref[...] = x2.astype(o_ref.dtype)


# ------------------------- tile / VMEM budget picking -------------------------

def _round_up(a, b):
    return (a + b - 1) // b * b


def _divisor_tiles(n, candidates):
    tiles = [c for c in candidates if c <= n and n % c == 0]
    return tiles if tiles else [n]


def _layer_footprint_bytes(tq, tkv, d_model, x_itemsize, w_itemsize):
    """Approximate per-step VMEM footprint (double-buffered I/O + f32 temps)."""
    lane = 128
    d_pad = max(_round_up(d_model, lane), lane)
    kv_pad = max(_round_up(tkv, lane), lane)
    io = 2 * (tq * d_pad * x_itemsize          # x_q tile (in)
              + tkv * d_pad * x_itemsize       # kv chunk (in)
              + d_pad * d_pad * w_itemsize     # w_ff
              + 5 * d_pad * 4                  # b_ff, g1, b1, g2, b2
              + tq * d_pad * x_itemsize)       # output tile
    scratch = tq * d_pad * 4 + 2 * tq * lane * 4        # acc + m/l (lane-padded)
    interm = 2 * tq * kv_pad * 4 + 6 * tq * d_pad * 4   # s/p + epilogue temps
    return io + scratch + interm


def _vmem_cap_bytes():
    """Generation-aware usable-VMEM cap (64 MiB on v7x, 128 MiB on v5e/v6e)."""
    try:
        phys = int(pltpu.get_tpu_info().vmem_capacity_bytes)
    except Exception:
        phys = 64 * 2**20  # conservative fallback (v7x-sized)
    return int(phys * 0.70)  # leave headroom for Mosaic internal scratch


def _pick_tiles(seq_len, d_model, x_itemsize, w_itemsize, cap_bytes):
    q_cands = _divisor_tiles(seq_len, (1024, 512, 256, 128, 64, 32, 16, 8))
    k_cands = _divisor_tiles(seq_len, (512, 256, 128, 64, 32, 16, 8))
    for tq in q_cands:                 # prefer the largest fitting tiles
        for tkv in k_cands:
            if _layer_footprint_bytes(tq, tkv, d_model,
                                      x_itemsize, w_itemsize) <= cap_bytes:
                return tq, tkv
    return q_cands[-1], k_cands[-1]    # smallest legal tiles as last resort


# ------------------------------- layer wrapper --------------------------------

def encoder_layer(x, w_ff, b_ff, g1, b1, g2, b2, *, tq=None, tkv=None,
                  mxu_dtype=None):
    """One EncoderLayer forward. x: (B, S, D)."""
    B, S, D = x.shape
    f32 = jnp.float32
    mxu_dtype = jnp.dtype(mxu_dtype) if mxu_dtype is not None else x.dtype

    isz = jnp.dtype(x.dtype).itemsize
    wsz = jnp.dtype(w_ff.dtype).itemsize
    cap = _vmem_cap_bytes()

    auto_tq, auto_tkv = _pick_tiles(S, D, isz, wsz, cap)
    if tq is None:
        tq = auto_tq
    if tkv is None:
        tkv = auto_tkv

    fp = _layer_footprint_bytes(tq, tkv, D, isz, wsz)
    vmem_bytes = int(min(cap, max(32 * 2**20, fp + (8 << 20))))

    b_ff2 = b_ff.astype(f32).reshape(1, D)
    g1_2 = g1.astype(f32).reshape(1, D)
    b1_2 = b1.astype(f32).reshape(1, D)
    g2_2 = g2.astype(f32).reshape(1, D)
    b2_2 = b2.astype(f32).reshape(1, D)

    vec_spec = pl.BlockSpec((1, D), lambda b, q, k: (0, 0))
    kernel = functools.partial(encoder_layer_kernel, mxu_dtype=mxu_dtype)

    return pl.pallas_call(
        kernel,
        out_shape=jax.ShapeDtypeStruct((B, S, D), x.dtype),
        grid_spec=pltpu.PrefetchScalarGridSpec(
            num_scalar_prefetch=0,
            grid=(B, S // tq, S // tkv),
            in_specs=[
                # query tile: kernel sees (tq, D)
                pl.BlockSpec((pl.Squeezed(), tq, D), lambda b, q, k: (b, q, 0)),
                # key/value chunk: kernel sees (tkv, D)
                pl.BlockSpec((pl.Squeezed(), tkv, D), lambda b, q, k: (b, k, 0)),
                pl.BlockSpec((D, D), lambda b, q, k: (0, 0)),   # w_ff
                vec_spec,                                        # b_ff
                vec_spec, vec_spec,                              # g1, b1
                vec_spec, vec_spec,                              # g2, b2
            ],
            out_specs=pl.BlockSpec((pl.Squeezed(), tq, D),
                                   lambda b, q, k: (b, q, 0)),
            scratch_shapes=[
                pltpu.VMEM((tq, 1), jnp.float32),   # running max
                pltpu.VMEM((tq, 1), jnp.float32),   # running denom
                pltpu.VMEM((tq, D), jnp.float32),   # output accumulator
            ],
        ),
        compiler_params=pltpu.CompilerParams(
            dimension_semantics=("parallel", "parallel", "arbitrary"),
            vmem_limit_bytes=vmem_bytes),
    )(x, x, w_ff, b_ff2, g1_2, b1_2, g2_2, b2_2)


def encoder(x, layer_params, *, mxu_dtype=None):
    """Encoder: stack of EncoderLayers. layer_params: list of dicts."""
    # TODO(synk): attention is over raw x (no Q/K/V projections, no heads),
    # mirroring the PyTorch forward which never uses w_q/w_k/w_v or
    # nn.MultiheadAttention; dropout is eval-mode identity.
    for p in layer_params:
        x = encoder_layer(x, p["w_ff"], p["b_ff"],
                          p["g1"], p["b1"], p["g2"], p["b2"],
                          mxu_dtype=mxu_dtype)
    return x


# ----------------------------- pure-JAX reference -----------------------------

def reference_encoder(x, layer_params):
    for p in layer_params:
        d = x.shape[-1]
        scores = jnp.einsum("bqd,bkd->bqk", x, x) / math.sqrt(d)
        w = jax.nn.softmax(scores, axis=-1)
        attn = jnp.einsum("bqk,bkd->bqd", w, x)
        x1 = _layer_norm_f32(x + attn, p["g1"], p["b1"])
        ff = x1 @ p["w_ff"].T + p["b_ff"]
        x = _layer_norm_f32(x1 + ff, p["g2"], p["b2"])
    return x


if __name__ == "__main__":
    B, S, D = 2, 8, 32          # batch, seq, d_model
    NUM_LAYERS = 2

    key = jax.random.PRNGKey(0)
    kx, key = jax.random.split(key)
    x = jax.random.normal(kx, (B, S, D), dtype=jnp.float32)

    bound = 1.0 / math.sqrt(D)  # nn.Linear default init bound
    layer_params = []
    for _ in range(NUM_LAYERS):
        kw, kb, key = jax.random.split(key, 3)
        layer_params.append(dict(
            w_ff=jax.random.uniform(kw, (D, D), jnp.float32, -bound, bound),
            b_ff=jax.random.uniform(kb, (D,), jnp.float32, -bound, bound),
            g1=jnp.ones((D,), jnp.float32), b1=jnp.zeros((D,), jnp.float32),
            g2=jnp.ones((D,), jnp.float32), b2=jnp.zeros((D,), jnp.float32),
        ))

    out = encoder(x, layer_params)          # mxu_dtype=jnp.bfloat16 for fast path
    out = jax.block_until_ready(out)

    ref = reference_encoder(x, layer_params)
    assert out.shape == (B, S, D)
    # approx-EUP reciprocal in the softmax ⇒ slightly looser tolerance.
    assert jnp.allclose(out, ref, atol=1e-3, rtol=1e-3), "mismatch vs reference"

    print("KERNEL_OK")
</pallas_src>

<mosaic_0001>
module attributes {stable_mosaic.version = 11 : i64} {
  func.func @encoder_layer_kernel(%arg0: i32, %arg1: i32, %arg2: i32, %arg3: memref<1x8x32xf32, #tpu.memory_space<vmem>>, %arg4: memref<1x8x32xf32, #tpu.memory_space<vmem>>, %arg5: memref<32x32xf32, #tpu.memory_space<vmem>>, %arg6: memref<1x32xf32, #tpu.memory_space<vmem>>, %arg7: memref<1x32xf32, #tpu.memory_space<vmem>>, %arg8: memref<1x32xf32, #tpu.memory_space<vmem>>, %arg9: memref<1x32xf32, #tpu.memory_space<vmem>>, %arg10: memref<1x32xf32, #tpu.memory_space<vmem>>, %arg11: memref<1x8x32xf32, #tpu.memory_space<vmem>>, %arg12: memref<8x1xf32, #tpu.memory_space<vmem>>, %arg13: memref<8x1xf32, #tpu.memory_space<vmem>>, %arg14: memref<8x32xf32, #tpu.memory_space<vmem>>) attributes {dimension_semantics = [#tpu.dimension_semantics<parallel>, #tpu.dimension_semantics<parallel>, #tpu.dimension_semantics<arbitrary>], iteration_bounds = array<i64: 2, 1, 1>, scalar_prefetch = 0 : i64, scratch_operands = 3 : i64, tpu.core_type = #tpu.core_type<tc>, window_params = [{transform_indices = @transform_0, window_bounds = array<i64: 1, 8, 32>}, {transform_indices = @transform_1, window_bounds = array<i64: 1, 8, 32>}, {pipeline_mode = #tpu.pipeline_mode<synchronous>, transform_indices = @transform_2, window_bounds = array<i64: 32, 32>}, {pipeline_mode = #tpu.pipeline_mode<synchronous>, transform_indices = @transform_3, window_bounds = array<i64: 1, 32>}, {pipeline_mode = #tpu.pipeline_mode<synchronous>, transform_indices = @transform_4, window_bounds = array<i64: 1, 32>}, {pipeline_mode = #tpu.pipeline_mode<synchronous>, transform_indices = @transform_5, window_bounds = array<i64: 1, 32>}, {pipeline_mode = #tpu.pipeline_mode<synchronous>, transform_indices = @transform_6, window_bounds = array<i64: 1, 32>}, {pipeline_mode = #tpu.pipeline_mode<synchronous>, transform_indices = @transform_7, window_bounds = array<i64: 1, 32>}, {transform_indices = @transform_8, window_bounds = array<i64: 1, 8, 32>}]} {
    %c0_i32 = arith.constant 0 : i32
    %0 = arith.cmpi eq, %arg2, %c0_i32 : i32
    %1 = arith.extui %0 : i1 to i32
    %c0_i32_0 = arith.constant 0 : i32
    %2 = arith.cmpi ne, %1, %c0_i32_0 : i32
    scf.if %2 {
      %cst_24 = arith.constant 0xFF800000 : f32
      %35 = vector.broadcast %cst_24 : f32 to vector<8x1xf32>
      %c0_25 = arith.constant 0 : index
      %c0_26 = arith.constant 0 : index
      %36 = vector.load %arg12[%c0_25, %c0_26] : memref<8x1xf32, #tpu.memory_space<vmem>>, vector<8x1xf32>
      tpu.vector_store %arg12[%c0_25, %c0_26], %35 {strides = array<i32>} : memref<8x1xf32, #tpu.memory_space<vmem>>, vector<8x1xf32>,
      %cst_27 = arith.constant 0.000000e+00 : f32
      %37 = vector.broadcast %cst_27 : f32 to vector<8x1xf32>
      %c0_28 = arith.constant 0 : index
      %c0_29 = arith.constant 0 : index
      %38 = vector.load %arg13[%c0_28, %c0_29] : memref<8x1xf32, #tpu.memory_space<vmem>>, vector<8x1xf32>
      tpu.vector_store %arg13[%c0_28, %c0_29], %37 {strides = array<i32>} : memref<8x1xf32, #tpu.memory_space<vmem>>, vector<8x1xf32>,
      %cst_30 = arith.constant 0.000000e+00 : f32
      %39 = vector.broadcast %cst_30 : f32 to vector<8x32xf32>
      %c0_31 = arith.constant 0 : index
      %c0_32 = arith.constant 0 : index
      %40 = vector.load %arg14[%c0_31, %c0_32] : memref<8x32xf32, #tpu.memory_space<vmem>>, vector<8x32xf32>
      tpu.vector_store %arg14[%c0_31, %c0_32], %39 {strides = array<i32>} : memref<8x32xf32, #tpu.memory_space<vmem>>, vector<8x32xf32>,
    } else {
    }
    %c0 = arith.constant 0 : index
    %c0_1 = arith.constant 0 : index
    %c0_2 = arith.constant 0 : index
    %3 = vector.load %arg3[%c0, %c0_1, %c0_2] : memref<1x8x32xf32, #tpu.memory_space<vmem>>, vector<1x8x32xf32>
    %4 = vector.shape_cast %3 : vector<1x8x32xf32> to vector<8x32xf32>
    %c0_3 = arith.constant 0 : index
    %c0_4 = arith.constant 0 : index
    %c0_5 = arith.constant 0 : index
    %5 = vector.load %arg4[%c0_3, %c0_4, %c0_5] : memref<1x8x32xf32, #tpu.memory_space<vmem>>, vector<1x8x32xf32>
    %6 = vector.shape_cast %5 : vector<1x8x32xf32> to vector<8x32xf32>
    %cst = arith.constant 0.176776692 : f32
    %7 = vector.broadcast %cst : f32 to vector<8x32xf32>
    %8 = arith.mulf %4, %7 : vector<8x32xf32>
    %cst_6 = arith.constant dense<0.000000e+00> : vector<8x8xf32>
    %9 = tpu.matmul %8, %6, %cst_6 {dimension_numbers = #tpu.dot_dimension_numbers<[1], [1], [0], [0], [0, 0, 1, 0], [], []>} : vector<8x32xf32>, vector<8x32xf32>, vector<8x8xf32> -> vector<8x8xf32>
    %c0_7 = arith.constant 0 : index
    %c0_8 = arith.constant 0 : index
    %10 = vector.load %arg12[%c0_7, %c0_8] : memref<8x1xf32, #tpu.memory_space<vmem>>, vector<8x1xf32>
    %cst_9 = arith.constant dense<0xFF800000> : vector<8xf32>
    %11 = vector.multi_reduction <maximumf>, %9, %cst_9 [1] : vector<8x8xf32> to vector<8xf32>
    %12 = vector.shape_cast %11 : vector<8xf32> to vector<8x1xf32>
    %13 = arith.maximumf %10, %12 : vector<8x1xf32>
    %14 = arith.subf %10, %13 : vector<8x1xf32>
    %15 = math.exp %14 : vector<8x1xf32>
    %16 = vector.broadcast %13 : vector<8x1xf32> to vector<8x8xf32>
    %17 = arith.subf %9, %16 : vector<8x8xf32>
    %18 = math.exp %17 : vector<8x8xf32>
    %c0_10 = arith.constant 0 : index
    %c0_11 = arith.constant 0 : index
    %19 = vector.load %arg13[%c0_10, %c0_11] : memref<8x1xf32, #tpu.memory_space<vmem>>, vector<8x1xf32>
    %20 = arith.mulf %15, %19 : vector<8x1xf32>
    %cst_12 = arith.constant dense<0.000000e+00> : vector<8xf32>
    %21 = vector.multi_reduction <add>, %18, %cst_12 [1] : vector<8x8xf32> to vector<8xf32>
    %22 = vector.shape_cast %21 : vector<8xf32> to vector<8x1xf32>
    %23 = arith.addf %20, %22 : vector<8x1xf32>
    %c0_13 = arith.constant 0 : index
    %c0_14 = arith.constant 0 : index
    %24 = vector.load %arg13[%c0_13, %c0_14] : memref<8x1xf32, #tpu.memory_space<vmem>>, vector<8x1xf32>
    tpu.vector_store %arg13[%c0_13, %c0_14], %23 {strides = array<i32>} : memref<8x1xf32, #tpu.memory_space<vmem>>, vector<8x1xf32>,
    %c0_15 = arith.constant 0 : index
    %c0_16 = arith.constant 0 : index
    %25 = vector.load %arg14[%c0_15, %c0_16] : memref<8x32xf32, #tpu.memory_space<vmem>>, vector<8x32xf32>
    %26 = vector.broadcast %15 : vector<8x1xf32> to vector<8x32xf32>
    %27 = arith.mulf %26, %25 : vector<8x32xf32>
    %cst_17 = arith.constant dense<0.000000e+00> : vector<8x32xf32>
    %28 = tpu.matmul %18, %6, %cst_17 {dimension_numbers = #tpu.dot_dimension_numbers<[1], [0], [0], [1], [0, 0, 1, 1], [], []>} : vector<8x8xf32>, vector<8x32xf32>, vector<8x32xf32> -> vector<8x32xf32>
    %29 = arith.addf %27, %28 : vector<8x32xf32>
    %c0_18 = arith.constant 0 : index
    %c0_19 = arith.constant 0 : index
    %30 = vector.load %arg14[%c0_18, %c0_19] : memref<8x32xf32, #tpu.memory_space<vmem>>, vector<8x32xf32>
    tpu.vector_store %arg14[%c0_18, %c0_19], %29 {strides = array<i32>} : memref<8x32xf32, #tpu.memory_space<vmem>>, vector<8x32xf32>,
    %c0_20 = arith.constant 0 : index
    %c0_21 = arith.constant 0 : index
    %31 = vector.load %arg12[%c0_20, %c0_21] : memref<8x1xf32, #tpu.memory_space<vmem>>, vector<8x1xf32>
    tpu.vector_store %arg12[%c0_20, %c0_21], %13 {strides = array<i32>} : memref<8x1xf32, #tpu.memory_space<vmem>>, vector<8x1xf32>,
    %c0_i32_22 = arith.constant 0 : i32
    %32 = arith.cmpi eq, %arg2, %c0_i32_22 : i32
    %33 = arith.extui %32 : i1 to i32
    %c0_i32_23 = arith.constant 0 : i32
    %34 = arith.cmpi ne, %33, %c0_i32_23 : i32
    scf.if %34 {
      %c0_24 = arith.constant 0 : index
      %c0_25 = arith.constant 0 : index
      %35 = vector.load %arg14[%c0_24, %c0_25] : memref<8x32xf32, #tpu.memory_space<vmem>>, vector<8x32xf32>
      %c0_26 = arith.constant 0 : index
      %c0_27 = arith.constant 0 : index
      %36 = vector.load %arg13[%c0_26, %c0_27] : memref<8x1xf32, #tpu.memory_space<vmem>>, vector<8x1xf32>
      %37 = tpu.reciprocal %36 {approx = true} : vector<8x1xf32> -> vector<8x1xf32>
      %38 = vector.broadcast %37 : vector<8x1xf32> to vector<8x32xf32>
      %39 = arith.mulf %35, %38 : vector<8x32xf32>
      %40 = arith.addf %4, %39 : vector<8x32xf32>
      %c0_28 = arith.constant 0 : index
      %c0_29 = arith.constant 0 : index
      %41 = vector.load %arg7[%c0_28, %c0_29] : memref<1x32xf32, #tpu.memory_space<vmem>>, vector<1x32xf32>
      %42 = vector.shape_cast %41 : vector<1x32xf32> to vector<32xf32>
      %c0_30 = arith.constant 0 : index
      %c0_31 = arith.constant 0 : index
      %43 = vector.load %arg8[%c0_30, %c0_31] : memref<1x32xf32, #tpu.memory_space<vmem>>, vector<1x32xf32>
      %44 = vector.shape_cast %43 : vector<1x32xf32> to vector<32xf32>
      %cst_32 = arith.constant dense<0.000000e+00> : vector<8xf32>
      %45 = vector.multi_reduction <add>, %40, %cst_32 [1] : vector<8x32xf32> to vector<8xf32>
      %46 = vector.shape_cast %45 : vector<8xf32> to vector<8x1xf32>
      %cst_33 = arith.constant 3.200000e+01 : f32
      %47 = vector.broadcast %cst_33 : f32 to vector<8x1xf32>
      %48 = arith.divf %46, %47 : vector<8x1xf32>
      %49 = vector.broadcast %48 : vector<8x1xf32> to vector<8x32xf32>
      %50 = arith.subf %40, %49 : vector<8x32xf32>
      %51 = arith.mulf %50, %50 : vector<8x32xf32>
      %cst_34 = arith.constant dense<0.000000e+00> : vector<8xf32>
      %52 = vector.multi_reduction <add>, %51, %cst_34 [1] : vector<8x32xf32> to vector<8xf32>
      %53 = vector.shape_cast %52 : vector<8xf32> to vector<8x1xf32>
      %cst_35 = arith.constant 3.200000e+01 : f32
      %54 = vector.broadcast %cst_35 : f32 to vector<8x1xf32>
      %55 = arith.divf %53, %54 : vector<8x1xf32>
      %56 = vector.broadcast %48 : vector<8x1xf32> to vector<8x32xf32>
      %57 = arith.subf %40, %56 : vector<8x32xf32>
      %cst_36 = arith.constant 9.99999974E-6 : f32
      %58 = vector.broadcast %cst_36 : f32 to vector<8x1xf32>
      %59 = arith.addf %55, %58 : vector<8x1xf32>
      %60 = math.rsqrt %59 : vector<8x1xf32>
      %61 = vector.broadcast %60 : vector<8x1xf32> to vector<8x32xf32>
      %62 = arith.mulf %57, %61 : vector<8x32xf32>
      %63 = vector.shape_cast %42 : vector<32xf32> to vector<1x32xf32>
      %64 = vector.broadcast %63 : vector<1x32xf32> to vector<8x32xf32>
      %65 = arith.mulf %62, %64 : vector<8x32xf32>
      %66 = vector.shape_cast %44 : vector<32xf32> to vector<1x32xf32>
      %67 = vector.broadcast %66 : vector<1x32xf32> to vector<8x32xf32>
      %68 = arith.addf %65, %67 : vector<8x32xf32>
      %c0_37 = arith.constant 0 : index
      %c0_38 = arith.constant 0 : index
      %69 = vector.load %arg5[%c0_37, %c0_38] : memref<32x32xf32, #tpu.memory_space<vmem>>, vector<32x32xf32>
      %cst_39 = arith.constant dense<0.000000e+00> : vector<8x32xf32>
      %70 = tpu.matmul %68, %69, %cst_39 {dimension_numbers = #tpu.dot_dimension_numbers<[1], [1], [0], [0], [0, 0, 1, 0], [], []>} : vector<8x32xf32>, vector<32x32xf32>, vector<8x32xf32> -> vector<8x32xf32>
      %c0_40 = arith.constant 0 : index
      %c0_41 = arith.constant 0 : index
      %71 = vector.load %arg6[%c0_40, %c0_41] : memref<1x32xf32, #tpu.memory_space<vmem>>, vector<1x32xf32>
      %72 = vector.shape_cast %71 : vector<1x32xf32> to vector<32xf32>
      %73 = vector.shape_cast %72 : vector<32xf32> to vector<1x32xf32>
      %74 = vector.broadcast %73 : vector<1x32xf32> to vector<8x32xf32>
      %75 = arith.addf %70, %74 : vector<8x32xf32>
      %76 = arith.addf %68, %75 : vector<8x32xf32>
      %c0_42 = arith.constant 0 : index
      %c0_43 = arith.constant 0 : index
      %77 = vector.load %arg9[%c0_42, %c0_43] : memref<1x32xf32, #tpu.memory_space<vmem>>, vector<1x32xf32>
      %78 = vector.shape_cast %77 : vector<1x32xf32> to vector<32xf32>
      %c0_44 = arith.constant 0 : index
      %c0_45 = arith.constant 0 : index
      %79 = vector.load %arg10[%c0_44, %c0_45] : memref<1x32xf32, #tpu.memory_space<vmem>>, vector<1x32xf32>
      %80 = vector.shape_cast %79 : vector<1x32xf32> to vector<32xf32>
      %cst_46 = arith.constant dense<0.000000e+00> : vector<8xf32>
      %81 = vector.multi_reduction <add>, %76, %cst_46 [1] : vector<8x32xf32> to vector<8xf32>
      %82 = vector.shape_cast %81 : vector<8xf32> to vector<8x1xf32>
      %cst_47 = arith.constant 3.200000e+01 : f32
      %83 = vector.broadcast %cst_47 : f32 to vector<8x1xf32>
      %84 = arith.divf %82, %83 : vector<8x1xf32>
      %85 = vector.broadcast %84 : vector<8x1xf32> to vector<8x32xf32>
      %86 = arith.subf %76, %85 : vector<8x32xf32>
      %87 = arith.mulf %86, %86 : vector<8x32xf32>
      %cst_48 = arith.constant dense<0.000000e+00> : vector<8xf32>
      %88 = vector.multi_reduction <add>, %87, %cst_48 [1] : vector<8x32xf32> to vector<8xf32>
      %89 = vector.shape_cast %88 : vector<8xf32> to vector<8x1xf32>
      %cst_49 = arith.constant 3.200000e+01 : f32
      %90 = vector.broadcast %cst_49 : f32 to vector<8x1xf32>
      %91 = arith.divf %89, %90 : vector<8x1xf32>
      %92 = vector.broadcast %84 : vector<8x1xf32> to vector<8x32xf32>
      %93 = arith.subf %76, %92 : vector<8x32xf32>
      %cst_50 = arith.constant 9.99999974E-6 : f32
      %94 = vector.broadcast %cst_50 : f32 to vector<8x1xf32>
      %95 = arith.addf %91, %94 : vector<8x1xf32>
      %96 = math.rsqrt %95 : vector<8x1xf32>
      %97 = vector.broadcast %96 : vector<8x1xf32> to vector<8x32xf32>
      %98 = arith.mulf %93, %97 : vector<8x32xf32>
      %99 = vector.shape_cast %78 : vector<32xf32> to vector<1x32xf32>
      %100 = vector.broadcast %99 : vector<1x32xf32> to vector<8x32xf32>
      %101 = arith.mulf %98, %100 : vector<8x32xf32>
      %102 = vector.shape_cast %80 : vector<32xf32> to vector<1x32xf32>
      %103 = vector.broadcast %102 : vector<1x32xf32> to vector<8x32xf32>
      %104 = arith.addf %101, %103 : vector<8x32xf32>
      %c0_51 = arith.constant 0 : index
      %c0_52 = arith.constant 0 : index
      %c0_53 = arith.constant 0 : index
      %105 = vector.load %arg11[%c0_51, %c0_52, %c0_53] : memref<1x8x32xf32, #tpu.memory_space<vmem>>, vector<1x8x32xf32>
      %106 = vector.shape_cast %105 : vector<1x8x32xf32> to vector<8x32xf32>
      %107 = vector.shape_cast %104 : vector<8x32xf32> to vector<1x8x32xf32>
      tpu.vector_store %arg11[%c0_51, %c0_52, %c0_53], %107 {strides = array<i32>} : memref<1x8x32xf32, #tpu.memory_space<vmem>>, vector<1x8x32xf32>,
    } else {
    }
    return
  }
  func.func @transform_0(%arg0: i32, %arg1: i32, %arg2: i32) -> (i32, i32, i32) {
    %c0_i32 = arith.constant 0 : i32
    %c0_i32_0 = arith.constant 0 : i32
    return %arg0, %arg1, %c0_i32 : i32, i32, i32
  }
  func.func @transform_1(%arg0: i32, %arg1: i32, %arg2: i32) -> (i32, i32, i32) {
    %c0_i32 = arith.constant 0 : i32
    %c0_i32_0 = arith.constant 0 : i32
    return %arg0, %arg2, %c0_i32 : i32, i32, i32
  }
  func.func @transform_2(%arg0: i32, %arg1: i32, %arg2: i32) -> (i32, i32) {
    %c0_i32 = arith.constant 0 : i32
    %c0_i32_0 = arith.constant 0 : i32
    %c0_i32_1 = arith.constant 0 : i32
    return %c0_i32, %c0_i32_0 : i32, i32
  }
  func.func @transform_3(%arg0: i32, %arg1: i32, %arg2: i32) -> (i32, i32) {
    %c0_i32 = arith.constant 0 : i32
    %c0_i32_0 = arith.constant 0 : i32
    %c0_i32_1 = arith.constant 0 : i32
    return %c0_i32, %c0_i32_0 : i32, i32
  }
  func.func @transform_4(%arg0: i32, %arg1: i32, %arg2: i32) -> (i32, i32) {
    %c0_i32 = arith.constant 0 : i32
    %c0_i32_0 = arith.constant 0 : i32
    %c0_i32_1 = arith.constant 0 : i32
    return %c0_i32, %c0_i32_0 : i32, i32
  }
  func.func @transform_5(%arg0: i32, %arg1: i32, %arg2: i32) -> (i32, i32) {
    %c0_i32 = arith.constant 0 : i32
    %c0_i32_0 = arith.constant 0 : i32
    %c0_i32_1 = arith.constant 0 : i32
    return %c0_i32, %c0_i32_0 : i32, i32
  }
  func.func @transform_6(%arg0: i32, %arg1: i32, %arg2: i32) -> (i32, i32) {
    %c0_i32 = arith.constant 0 : i32
    %c0_i32_0 = arith.constant 0 : i32
    %c0_i32_1 = arith.constant 0 : i32
    return %c0_i32, %c0_i32_0 : i32, i32
  }
  func.func @transform_7(%arg0: i32, %arg1: i32, %arg2: i32) -> (i32, i32) {
    %c0_i32 = arith.constant 0 : i32
    %c0_i32_0 = arith.constant 0 : i32
    %c0_i32_1 = arith.constant 0 : i32
    return %c0_i32, %c0_i32_0 : i32, i32
  }
  func.func @transform_8(%arg0: i32, %arg1: i32, %arg2: i32) -> (i32, i32, i32) {
    %c0_i32 = arith.constant 0 : i32
    %c0_i32_0 = arith.constant 0 : i32
    return %arg0, %arg1, %c0_i32 : i32, i32, i32
  }
}

</mosaic_0001>

<bundles_post_ra>
// kernel: tpu_custom_call.1
= control target key start
LH: loop header
LB: loop body
LE: loop exit
PB: predicated region body
PF: predicated region fallthrough
CT: control target
= control target key end

     0   :  { %s1584_s0 = inlined_call_operand.hbm [shape: f32[2,8,32], index: 0, kind: input, shape index: {}]   ;;  %s1585_s1 = inlined_call_operand.hbm [shape: f32[2,8,32], index: 1, kind: input, shape index: {}]   ;;  %s1586_s2 = inlined_call_operand.hbm [shape: f32[32,32], index: 2, kind: input, shape index: {}]   ;;  %s1587_s3 = inlined_call_operand.vmem [shape: f32[1,32], index: 3, kind: input, shape index: {}]   ;;  %s1588_s4 = inlined_call_operand.vmem [shape: f32[1,32], index: 4, kind: input, shape index: {}]   ;;  %s1589_s5 = inlined_call_operand.vmem [shape: f32[1,32], index: 5, kind: input, shape index: {}]   ;;  %s1590_s6 = inlined_call_operand.vmem [shape: f32[1,32], index: 6, kind: input, shape index: {}]   ;;  %s1591_s7 = inlined_call_operand.vmem [shape: f32[1,32], index: 7, kind: input, shape index: {}]   ;;  %s1592_s8 = inlined_call_operand.hbm [shape: f32[2,8,32], index: 8, kind: output, shape index: {}]  }
   0x1   :  { %1602 = sst [smem:[#allocation22_spill]] %s1586_s2 }
   0x2   :  { %13 = vsyncpa [#allocation6], 0 }
   0x3   :  { %15 = vsyncpa [#allocation6 + $0x1], 0 }
   0x4   :  { %16 = vsyncpa [#allocation9], 0 }
   0x5   :  { %18 = vsyncpa [#allocation9 + $0x1], 0 }
   0x6   :  { %19 = vsyncpa [#allocation7], 0 }
   0x7   :  { %21 = vsyncpa [#allocation7 + $0x1], 0  ;;  %s1299_s27 = smov 0   ;;  %s1301_s28 = smov 0  }
   0x8   :  { %s1303_s29 = smov 0   ;;  %s1305_s30 = smov 0  }
   0x9   :  { %s1307_s9 = smov 0   ;;  %s1309_s10 = smov 0  }
   0xa LB: > { %1603 = sst [smem:[#allocation16_spill]] %s1221_s27  ;;  %s1330_s11 = sadd.s32 4294967295, %s1241_s10   ;;  %s1241_s10 = sphi %s1309_s10, %s27_s10   ;;  %s1237_s9 = sphi %s1307_s9, %s1630_s9   ;;  %s1233_s30 = sphi %s1305_s30, %s1629_s30   ;;  %s1229_s29 = sphi %s1303_s29, %s1628_s29   ;;  %s1225_s28 = sphi %s1301_s28, %s1632_s28   ;;  %s1221_s27 = sphi %s1299_s27, %s1631_s27  }
   0xb   : > { %1604 = sst [smem:[#allocation17_spill]] %s1229_s29  ;;  %s898_s12 = sadd.s32 4294967294, %s1241_s10  }
   0xc   : > { %1605 = sst [smem:[#allocation18_spill]] %s1237_s9  ;;  %p68_p0 = scmp.ne.s32.totalorder %s1225_s28, %s1221_s27 }
   0xd   : > { %p1593_p1 = scmp.eq.s32.totalorder %s1330_s11, 0  ;;  %p254_p3 = scmp.eq.s32.totalorder %s898_s12, 1 }
   0xe   : > { %p899_p5 = scmp.ge.s32.totalorder %s1241_s10, 1  ;;  %p261_p7 = scmp.lt.s32.totalorder %s1241_s10, 3 }
   0xf   : > { %p1339_p4 = por %p1593_p1, %p68_p0  ;;  %p1344_p6 = por %p254_p3, %p68_p0 }
  0x10   : > { %p1349_p8 = pnand %p899_p5, %p261_p7  ;;  %s1243_s16 = smov [#allocation10]  }
  0x11   : > { %s1606_s13 = scalar_select %p1339_p4, 1, 0 }
  0x12   : > { %s1607_s14 = scalar_select %p1344_p6, 1, 0 }
  0x13   : > { %s1609_s15 = scalar_select %p1349_p8, 1, 0 }
  0x14   : > { %1608 = sst [smem:[#allocation19_spill]] %s1607_s14  ;;  %s273_s17 = sshll.u32 %s1243_s16, 4  ;;  %s274_s17 = int_to_ptr.vmem [resolvable:$true] %s273_s17 }
  0x15   : > { %p976_p9 = pneg %p1349_p8  ;;  %s46_s19 = sadd.s32 1, %s1237_s9 }
  0x16   : > { %s1611_s2 = sld [smem:[#allocation22_spill]] }
  0x17   : > { %p1358_p11 = pnand %p976_p9, %p1593_p1 }
  0x19   : > { %p1065_p13 = pneg %p1358_p11 }
  0x1c   : > { %s1063_s22 = scalar_lea.hbm %s1611_s2, 512 }
  0x1d   : > { %p1064_p12 = scmp.ne.s32.totalorder %s1611_s2, %s1063_s22  ;;  %p1070_p5 = scmp.lt.u32.totalorder %s1063_s22, %s1611_s2 }
  0x1f   : > { %p1066_p0 = pnand %p1065_p13, %p1064_p12 }
  0x21   : > { %p1067_p3 = pneg %p1066_p0 }
  0x23   : > { %p1072_p7 = pnand %p1070_p5, %p1067_p3 }
  0x25   : > { %1075 = shalt.err (!%p1072_p7)
}
  0x26   : > { %s1076_s12 = scalar_lea.vmem %s274_s17, 512  ;;  %p1084_p2 = scmp.lt.s32.totalorder %s274_s17, %s274_s17 }
  0x27   : > { %p1077_p9 = scmp.ne.s32.totalorder %s274_s17, %s1076_s12  ;;  %p1085_p6 = scmp.lt.s32.totalorder %s1076_s12, %s1076_s12 }
  0x29   : > { %p1079_p10 = pnand %p1077_p9, %p1065_p13  ;;  %p1086_p4 = por %p1085_p6, %p1084_p2 }
  0x2b   : > { %p1080_p1 = pneg %p1079_p10 }
  0x2d   : > { %p1087_p8 = pnand %p1086_p4, %p1080_p1 }
  0x2f   : > { %1090 = shalt.err (!%p1087_p8)
}
  0x30   : > { %s1244_s16 = smov 128   ;;  %s1245_s20 = smov 8  }
  0x31   : > { %979 = dma.hbm_to_vmem [thread:$0]  (!%p1358_p11), %s1611_s2, 512, %s274_s17, [#allocation9], %s1244_s16, %s1244_s16, %s1245_s20  }
  0x32   : > { %p48_p1 = scmp.ge.s32.totalorder %s46_s19, 2  ;;  %s55_s23 = sadd.s32 1, %s1229_s29 }
  0x33   : > { %p62_p2 = scmp.ne.s32.totalorder %s1229_s29, %s1225_s28  ;;  %p63_p4 = scmp.eq.s32.totalorder %s1241_s10, 0 }
  0x34   : > { %s1634_s19 = smov (%p48_p1, %s46_s19), 0  ;;  %p1614_p8 = scmp.eq.s32.totalorder %s1330_s11, 1 }
  0x35   : > { %1612 = sst [smem:[#allocation20_spill]] %s1634_s19  ;;  %p1385_p6 = por %p63_p4, %p62_p2 }
  0x36   : > { %p1391_p10 = por %p1614_p8, %p62_p2  ;;  %s50_s25 = ssub.s32 %s1237_s9, %s1634_s19 }
  0x37   : > { %p992_p11 = scmp.lt.s32.totalorder %s1241_s10, 2  ;;  %p53_p12 = scmp.eq.s32.totalorder %s50_s25, 0 }
  0x38   : > { %s1615_s18 = scalar_select %p1391_p10, 1, 0 }
  0x39   : > { %s302_s17 = sand.u32 1, %s1229_s29   ;;  %s903_s16 = sshll.u32 %s1237_s9, 7 }
  0x3a   : > { %s1399_s26 = sshll.u32 %s302_s17, 3  ;;  %s1408_s22 = scalar_lea.hbm %s1584_s0, %s903_s16 }
  0x3b   : > { %s1402_s12 = scalar_select %p53_p12, %s1229_s29, %s55_s23  }
  0x3c   : > { %s306_s2 = scalar_lea.vmem [#allocation5], %s1399_s26  ;;  %p1415_p13 = pnand %p992_p11, %p1385_p6 }
  0x3d   : > { %1616 = sst [smem:[#allocation21_spill]] %s1402_s12  ;;  %s314_s19 = sshll.u32 %s306_s2, 4  ;;  %s1411_s19 = int_to_ptr.vmem [resolvable:$true] %s314_s19 }
  0x3e   : > { %s1422_s20 = scalar_lea.hbm %s1585_s1, %s903_s16  ;;  %s321_s21 = sand.u32 1, %s1241_s10  }
  0x3f   : > { %s303_s12 = scalar_lea.sflag [#allocation6], %s302_s17  ;;  %s1091_s29 = scalar_lea.hbm %s1408_s22, 128 }
  0x40   : > { %p1092_p0 = scmp.ne.s32.totalorder %s1408_s22, %s1091_s29  ;;  %p1093_p3 = pneg %p1415_p13 }
  0x41   : > { %s1096_s14 = scalar_lea.hbm %s1584_s0, 256  ;;  %p1097_p9 = scmp.lt.u32.totalorder %s1408_s22, %s1584_s0 }
  0x42   : > { %p1094_p5 = pnand %p1093_p3, %p1092_p0  ;;  %p1098_p1 = scmp.lt.u32.totalorder %s1096_s14, %s1091_s29 }
  0x43   : > { %p1100_p4 = scmp.lt.u32.totalorder %s1091_s29, %s1408_s22 }
  0x44   : > { %p1095_p7 = pneg %p1094_p5  ;;  %p1099_p2 = por %p1098_p1, %p1097_p9 }
  0x46   : > { %p1101_p6 = por %p1100_p4, %p1099_p2 }
  0x48   : > { %p1102_p8 = pnand %p1101_p6, %p1095_p7 }
  0x4a   : > { %1105 = shalt.err (!%p1102_p8)
}
  0x4b   : > { %s1106_s17 = scalar_lea.vmem %s1411_s19, 128  ;;  %s1246_s16 = smov [#allocation5]  }
  0x4c   : > { %p1107_p11 = scmp.ne.s32.totalorder %s1411_s19, %s1106_s17  ;;  %s1111_s23 = sshll.u32 %s1246_s16, 4  ;;  %s1112_s23 = int_to_ptr.vmem [resolvable:$false] %s1111_s23 }
  0x4d   : > { %s1113_s27 = scalar_lea.vmem %s1112_s23, 256  ;;  %p1114_p5 = scmp.lt.s32.totalorder %s1411_s19, %s1112_s23 }
  0x4e   : > { %p1109_p12 = pnand %p1107_p11, %p1093_p3  ;;  %p1115_p9 = scmp.lt.s32.totalorder %s1113_s27, %s1106_s17 }
  0x50   : > { %p1110_p0 = pneg %p1109_p12  ;;  %p1116_p1 = por %p1115_p9, %p1114_p5 }
  0x52   : > { %p1117_p2 = pnand %p1116_p1, %p1110_p0 }
  0x54   : > { %1120 = shalt.err (!%p1117_p2)
}
  0x55   : > { %983 = dma.hbm_to_vmem [thread:$0]  (!%p1415_p13), %s1408_s22, 128, %s1411_s19, %s303_s12  }
  0x56   : > { %s325_s29 = scalar_lea.vmem [#allocation8], %s1399_s26  ;;  %s322_s2 = scalar_lea.sflag [#allocation9], %s321_s21 }
  0x57   : > { %s333_s14 = sshll.u32 %s325_s29, 4  ;;  %s1121_s24 = scalar_lea.hbm %s1422_s20, 128  ;;  %s334_s14 = int_to_ptr.vmem [resolvable:$true] %s333_s14 }
  0x58   : > { %p1122_p7 = scmp.ne.s32.totalorder %s1422_s20, %s1121_s24  ;;  %s1126_s16 = scalar_lea.hbm %s1585_s1, 256 }
  0x59   : > { %p1127_p8 = scmp.lt.u32.totalorder %s1422_s20, %s1585_s1  ;;  %p1128_p11 = scmp.lt.u32.totalorder %s1126_s16, %s1121_s24 }
  0x5a   : > { %p1124_p4 = pnand %p1122_p7, %p1093_p3  ;;  %p1130_p0 = scmp.lt.u32.totalorder %s1121_s24, %s1422_s20 }
  0x5b   : > { %p1129_p12 = por %p1128_p11, %p1127_p8 }
  0x5c   : > { %p1125_p6 = pneg %p1124_p4 }
  0x5d   : > { %p1131_p5 = por %p1130_p0, %p1129_p12 }
  0x5f   : > { %p1132_p9 = pnand %p1131_p5, %p1125_p6 }
  0x61   : > { %1135 = shalt.err (!%p1132_p9)
}
  0x62   : > { %s1136_s19 = scalar_lea.vmem %s334_s14, 128  ;;  %s1247_s26 = smov [#allocation8]  }
  0x63   : > { %p1137_p1 = scmp.ne.s32.totalorder %s334_s14, %s1136_s19  ;;  %s1141_s12 = sshll.u32 %s1247_s26, 4  ;;  %s1142_s12 = int_to_ptr.vmem [resolvable:$false] %s1141_s12 }
  0x64   : > { %s1143_s22 = scalar_lea.vmem %s1142_s12, 256  ;;  %p1144_p4 = scmp.lt.s32.totalorder %s334_s14, %s1142_s12 }
  0x65   : > { %p1139_p2 = pnand %p1137_p1, %p1093_p3  ;;  %p1145_p10 = scmp.lt.s32.totalorder %s1143_s22, %s1136_s19 }
  0x67   : > { %p1140_p7 = pneg %p1139_p2  ;;  %p1146_p8 = por %p1145_p10, %p1144_p4 }
  0x69   : > { %p1147_p11 = pnand %p1146_p8, %p1140_p7 }
  0x6b   : > { %1150 = shalt.err (!%p1147_p11)
}
  0x6c   : > { %986 = dma.hbm_to_vmem [thread:$0]  (!%p1415_p13), %s1422_s20, 128, %s334_s14, %s322_s2  }
  0x6d   : > { %p1618_p6 = scmp.ne.s32.totalorder %s1609_s15, 0 }
  0x6e   : > { %s1475_s21 = sand.u32 (!%p1618_p6), 1, %s1225_s28   ;;  %p1619_p10 = scmp.ne.s32.totalorder (!%p1618_p6), %s1606_s13, 0 }
  0x6f   : > { %342 = sbr.rel (%p1618_p6) target bundleno = 1782 (0x6f6), region = 52  ;;  %s1478_s29 = sshll.u32 (!%p1618_p6), %s1475_s21, 3 }
  0x70   : > { %s345_s24 = scalar_lea.sflag (!%p1618_p6), [#allocation6], %s1475_s21  ;;  %s348_s9 = scalar_lea.vmem (!%p1618_p6), [#allocation5], %s1478_s29 }
  0x76   : > { %1204 = dma.done.wait (%p1619_p10), %s345_s24, 128  }
  0x77   : > { %1206 = vsyncadd (%p1619_p10), %s345_s24, 4294967168  ;;  %s353_s15 = sand.u32 1, %s1330_s11   ;;  %s357_s20 = scalar_lea.vmem [#allocation8], %s1478_s29 }
  0x78   : > { %s354_s25 = scalar_lea.sflag [#allocation9], %s353_s15 }
  0x79   : > { %1208 = dma.done.wait (%p1619_p10), %s354_s25, 128  }
  0x7a   : > { %1210 = vsyncadd (%p1619_p10), %s354_s25, 4294967168  ;;  %p1620_p13 = scmp.eq.s32.totalorder %s1330_s11, 0 }
  0x7c   : > { %1212 = dma.done.wait (%p1620_p13), [#allocation9], 512   ;;  %p1621_p3 = pmov %p1620_p13 }
  0x7d   : > { %vm406_vm0 = vcmask 261120   ;;  %v1248_v0 = vmov 0.0   ;;  %vm1249_vm1 = vmmov 0   ;;  %v409_v1 = vld [vmem:[%s357_s20] sm:$0xff]  ;;  %v408_v2 = vld [vmem:[%s348_s9] sm:$0xff]  ;;  %vm403_vm2 = vcmask 7168  }
  0x7e   : > { %1214 = vsyncadd (%p1621_p3), [#allocation9], 4294966784  ;;  %407 = vst.msk [vmem:[#allocation4] sm:$0xff] %vm406_vm0, %v1248_v0  ;;  %937 = vmatprep.subr.mxu0 %v1248_v0  ;;  %939 = vmatprep.mubr.msk.f32.mxu0 %vm1249_vm1, %v1248_v0  ;;  %v410_v3 = vmul.f32 0.17677669, %v408_v2  ;;  %v1250_v4 = vmov -inf  }
  0x7f   : > { %955 = vmatprep.mubr.msk.f32.mxu1 %vm1249_vm1, %v1248_v0  ;;  %938 = vmatpush3.xpose.msk.msra.mxu0 %vm406_vm0, %v409_v1  ;;  %404 = vst.msk [vmem:[#allocation2] sm:$0xff] %vm403_vm2, %v1250_v4  ;;  %405 = vst.msk [vmem:[#allocation3] sm:$0xff] %vm403_vm2, %v1248_v0  ;;  %vm489_vm3 = vcmask 64512   ;;  %v1251_v8 = vmov 0   ;;  %v639_v42 = vld [vmem:[#allocation10] sm:$0xff]  ;;  %v640_v43 = vld [vmem:[#allocation10 + $0x8] sm:$0xff] }
  0x80   : > { %942 = vmatprep.subr.mxu0 %v1248_v0  ;;  %1051 = vset.pattern.permute.xlu0 %v1251_v8  ;;  %v959_v44 = vpack.c.bf16 %v640_v43, %v639_v42  ;;  %vm960_vm4 = vmpackc.low %vm406_vm0, %vm406_vm0  ;;  %v1252_v45 = vmov 0.0|0.0   ;;  %v641_v46 = vld [vmem:[#allocation10 + $0x10] sm:$0xff]  ;;  %v642_v47 = vld [vmem:[#allocation10 + $0x18] sm:$0xff]  ;;  %s925_s12 = sshll.u32 %s1233_s30, 7  ;;  %s398_s22 = scalar_lea.vmem [#allocation11], %s1478_s29 }
  0x81   : > { %1052 = vset.pattern.permute.xlu1 %v1251_v8  ;;  %958 = vmatprep.subr.bf16.mxu1 %v1252_v45  ;;  %v963_v48 = vpack.c.bf16 %v642_v47, %v641_v46  ;;  %v914_v53 = vld [vmem:[%s1588_s4] ss:$0 sm:$0xff]  ;;  %s781_s24 = sshll.u32 %s398_s22, 4  ;;  %s1534_s25 = scalar_lea.hbm %s1592_s8, %s925_s12  ;;  %s1536_s24 = int_to_ptr.vmem [resolvable:$true] %s781_s24 }
  0x82   : > { %940 = vmatmul.mubr.msk.f32.vlgmr.msra.gmra.mrb[0].mxu0 %vm406_vm0, %v410_v3  ;;  %961 = vmatpush3.bf16.xpose.msk.msra.mxu1 %vm960_vm4, %v959_v44  ;;  %v915_v55 = vld [vmem:[%s1589_s5] ss:$0 sm:$0xff]  ;;  %s767_s20 = scalar_lea.sflag [#allocation7], %s1475_s21  ;;  %s1151_s11 = scalar_lea.vmem %s1536_s24, 128 }
  0x83   : > { %943 = vmatpush3.msra.mxu0 %v409_v1  ;;  %944 = vmatprep.mubr.msk.f32.mxu0 %vm1249_vm1, %v1248_v0  ;;  %v916_v58 = vld [vmem:[%s1587_s3] ss:$0 sm:$0xff]  ;;  %p1152_p12 = scmp.ne.s32.totalorder %s1536_s24, %s1151_s11  ;;  %p1622_p0 = scmp.ne.s32.totalorder %s1615_s18, 0 }
  0x84   : > { %962 = vmatprep.subr.bf16.mxu1 %v1252_v45  ;;  %s1253_s30 = smov [#allocation11]  }
  0x85   : > { %v513_v26 = vld [vmem:[#allocation4] sm:$0xff]  ;;  %p1153_p5 = pnand %p1152_p12, %p1622_p0  ;;  %s1155_s29 = sshll.u32 %s1253_s30, 4  ;;  %s1156_s29 = int_to_ptr.vmem [resolvable:$false] %s1155_s29 }
  0x86   : > { %v488_v9 = vld [vmem:[#allocation2] sm:$0xff]  ;;  %v505_v20 = vld [vmem:[#allocation3] sm:$0xff]  ;;  %s1157_s13 = scalar_lea.vmem %s1156_s29, 256  ;;  %p1158_p1 = scmp.lt.s32.totalorder %s1536_s24, %s1156_s29 }
  0x87   : > { %p1154_p9 = pneg %p1153_p5  ;;  %p1159_p2 = scmp.lt.s32.totalorder %s1157_s13, %s1151_s11 }
  0x89   : > { %p1160_p7 = por %p1159_p2, %p1158_p1 }
  0x8a   : > { %965 = vmatpush3.bf16.xpose.msk.msra.mxu1 %vm960_vm4, %v963_v48 }
  0x8b   : > { %p1161_p4 = pnand %p1160_p7, %p1154_p9 }
 0x155   : > { %v484_v5 = vpop.f32.mrb[0].mxu0 }
 0x156   : > { %v941_v6 = vpop.f32.mrb[1].mxu0  ;;  %v490_v7 = vsel %vm489_vm3, %v484_v5, -inf }
 0x157   : > { %491 = vmax.xlane.f32.xlu0 %v490_v7 }
 0x1e4   : > { %v492_v10 = vpop.xlane.xlu0 %491 }
 0x1e5   : > { %v493_v11 = vmax.f32 %v488_v9, %v492_v10 }
 0x1e7   : > { %v494_v12 = vsub.f32 %v488_v9, %v493_v11  ;;  %595 = vst.msk [vmem:[#allocation2] sm:$0xff] %vm403_vm2, %v493_v11  ;;  %499 = vperm.xlu0 %1051, %v493_v11   ;;  %v922_v9 = vld [vmem:[%s1590_s6] ss:$0 sm:$0xff] }
 0x1e8   : > { %v923_v11 = vld [vmem:[%s1591_s7] ss:$0 sm:$0xff] }
 0x1e9   : > { %v495_v18 = vmul.f32 1.442695, %v494_v12 }
 0x266   : > { %v500_v13 = vpop.permute.xlu0 %499 }
 0x267   : > { %v502_v14 = vsub.f32 %v484_v5, %v500_v13 }
 0x269   : > { %v503_v15 = vmul.f32 1.442695, %v502_v14 }
 0x26b   : > { %1053 = vpow2.f32 %v503_v15 }
 0x26c   : > { %1055 = vpow2.f32 %v495_v18 }
 0x275   : > { %v1054_v16 = vpop.eup %1053 }
 0x276   : > { %945 = vmatmul.mubr.msk.f32.vlgmr.msra.gmra.mrb[2].mxu0 %vm489_vm3, %v1054_v16  ;;  %v507_v17 = vsel %vm489_vm3, %v1054_v16, 0.0  ;;  %v1056_v19 = vpop.eup %1055 }
 0x277   : > { %508 = vadd.xlane.f32.xlu1 %v507_v17  ;;  %v506_v21 = vmul.f32 %v1056_v19, %v505_v20 }
 0x288   : > { %516 = vperm.xlu1 %1052, %v1056_v19  }
 0x304   : > { %v509_v22 = vpop.xlane.xlu1 %508 }
 0x305   : > { %v510_v23 = vadd.f32 %v509_v22, %v506_v21 }
 0x307   : > { %512 = vst.msk [vmem:[#allocation3] sm:$0xff] %vm403_vm2, %v510_v23 }
 0x308   : > { %v517_v27 = vpop.permute.xlu1 %516 }
 0x309   : > { %v519_v28 = vmul.f32 %v517_v27, %v513_v26 }
 0x30e   : > { %v600_v24 = vld [vmem:[#allocation3] sm:$0xff] }
 0x30f   : > { %1057 = vrcp.f32 %v600_v24 }
 0x319   : > { %v1058_v25 = vpop.eup %1057 }
 0x31a   : > { %604 = vperm.xlu1 %1052, %v1058_v25  }
 0x349   : > { %v589_v29 = vpop.f32.mrb[2].mxu0 }
 0x34a   : > { %v593_v30 = vadd.f32 %v589_v29, %v519_v28  ;;  %v946_v31 = vpop.f32.mrb[3].mxu0 }
 0x34c   : > { %594 = vst.msk [vmem:[#allocation4] sm:$0xff] %vm406_vm0, %v593_v30 }
 0x353   : > { %v599_v32 = vld [vmem:[#allocation4] sm:$0xff] }
 0x399   : > { %v605_v33 = vpop.permute.xlu1 %604 }
 0x39a   : > { %v607_v34 = vmul.f32 %v605_v33, %v599_v32 }
 0x39c   : > { %v608_v35 = vadd.f32 %v607_v34, %v408_v2 }
 0x39e   : > { %v611_v36 = vsel %vm406_vm0, %v608_v35, 0.0 }
 0x39f   : > { %612 = vadd.xlane.f32.xlu1 %v611_v36 }
 0x42c   : > { %v613_v37 = vpop.xlane.xlu1 %612 }
 0x42d   : > { %v615_v38 = vmul.f32 0.03125, %v613_v37 }
 0x42f   : > { %v616_v39 = vsub.f32 %v608_v35, %v615_v38 }
 0x431   : > { %v617_v40 = vmul.f32 %v616_v39, %v616_v39 }
 0x433   : > { %v618_v41 = vsel %vm406_vm0, %v617_v40, 0.0 }
 0x434   : > { %619 = vadd.xlane.f32.xlu0 %v618_v41 }
 0x4c1   : > { %v620_v49 = vpop.xlane.xlu0 %619 }
 0x4c2   : > { %v621_v50 = vmul.f32 0.03125, %v620_v49 }
 0x4c4   : > { %v622_v51 = vadd.f32 1e-05, %v621_v50 }
 0x4c6   : > { %1059 = vrsqrt.f32 %v622_v51 }
 0x4d0   : > { %v1060_v52 = vpop.eup %1059 }
 0x4d1   : > { %v624_v54 = vmul.f32 %v1060_v52, %v616_v39 }
 0x4d3   : > { %v631_v56 = vmul.f32 %v914_v53, %v624_v54 }
 0x4d5   : > { %v638_v57 = vadd.f32 %v915_v55, %v631_v56 }
 0x4d7   : > { %956 = vmatmul.mubr.msk.f32.vlgmr.msra.gmra.mrb[0].mxu1 %vm406_vm0, %v638_v57 }
 0x5aa   : > { %v731_v59 = vpop.f32.mrb[0].mxu1 }
 0x5ab   : > { %v732_v60 = vadd.f32 %v916_v58, %v731_v59  ;;  %v957_v61 = vpop.f32.mrb[1].mxu1 }
 0x5ad   : > { %v735_v62 = vadd.f32 %v732_v60, %v638_v57 }
 0x5af   : > { %v738_v63 = vsel %vm406_vm0, %v735_v62, 0.0 }
 0x5b0   : > { %739 = vadd.xlane.f32.xlu1 %v738_v63 }
 0x63d   : > { %v740_v0 = vpop.xlane.xlu1 %739 }
 0x63e   : > { %v741_v1 = vmul.f32 0.03125, %v740_v0 }
 0x640   : > { %v742_v2 = vsub.f32 %v735_v62, %v741_v1 }
 0x642   : > { %v743_v3 = vmul.f32 %v742_v2, %v742_v2 }
 0x644   : > { %v744_v4 = vsel %vm406_vm0, %v743_v3, 0.0 }
 0x645   : > { %745 = vadd.xlane.f32.xlu1 %v744_v4 }
 0x6d2   : > { %v746_v5 = vpop.xlane.xlu1 %745 }
 0x6d3   : > { %v747_v6 = vmul.f32 0.03125, %v746_v5 }
 0x6d5   : > { %v748_v7 = vadd.f32 1e-05, %v747_v6 }
 0x6d7   : > { %1061 = vrsqrt.f32 %v748_v7 }
 0x6e1   : > { %v1062_v8 = vpop.eup %1061 }
 0x6e2   : > { %v750_v10 = vmul.f32 %v1062_v8, %v742_v2 }
 0x6e4   : > { %v757_v12 = vmul.f32 %v922_v9, %v750_v10 }
 0x6e6   : > { %v764_v13 = vadd.f32 %v923_v11, %v757_v12 }
 0x6e8   : > { %765 = vst.msk [vmem:[%s398_s22] sm:$0xff] %vm406_vm0, %v764_v13 }
 0x6e9   : > { %1164 = shalt.err (!%p1161_p4)
}
 0x6ea   : > { %s1165_s21 = scalar_lea.hbm %s1534_s25, 128  ;;  %s1169_s17 = scalar_lea.hbm %s1592_s8, 256 }
 0x6eb   : > { %p1166_p8 = scmp.ne.s32.totalorder %s1534_s25, %s1165_s21  ;;  %p1170_p10 = scmp.lt.u32.totalorder %s1534_s25, %s1592_s8 }
 0x6ec   : > { %p1171_p13 = scmp.lt.u32.totalorder %s1169_s17, %s1165_s21  ;;  %p1173_p12 = scmp.lt.u32.totalorder %s1165_s21, %s1534_s25 }
 0x6ed   : > { %p1167_p11 = pnand %p1166_p8, %p1622_p0 }
 0x6ee   : > { %p1172_p3 = por %p1171_p13, %p1170_p10 }
 0x6ef   : > { %p1168_p6 = pneg %p1167_p11 }
 0x6f0   : > { %p1174_p5 = por %p1173_p12, %p1172_p3 }
 0x6f2   : > { %p1175_p9 = pnand %p1174_p5, %p1168_p6 }
 0x6f4   : > { %1178 = shalt.err (!%p1175_p9)
}
 0x6f5   : > { %974 = dma.vmem_to_hbm [thread:$0]  (%p1622_p0), %s1536_s24, 128, %s1534_s25, %s767_s20  }
 0x6f6 PF: > { %s1623_s27 = sld [smem:[#allocation16_spill]]  ;;  %s1624_s19 = sld [smem:[#allocation19_spill]] }
 0x6f7   : > { %p1626_p2 = scmp.ge.s32.totalorder %s1241_s10, 2 }
 0x6fc   : > { %s793_s26 = sand.u32 1, %s1623_s27   ;;  %p1625_p1 = scmp.ne.s32.totalorder %s1624_s19, 0 }
 0x6fd   : > { %s794_s12 = scalar_lea.sflag [#allocation7], %s793_s26 }
 0x6fe   : > { %p988_p7 = pnand %p1626_p2, %p1625_p1 }
 0x700   : > { %1216 = dma.done.wait (!%p988_p7), %s794_s12, 128  }
 0x701   : > { %1218 = vsyncadd (!%p988_p7), %s794_s12, 4294967168  ;;  %s27_s10 = sadd.s32 1, %s1241_s10   ;;  %s1627_s22 = sld [smem:[#allocation17_spill]] }
 0x702   : > { %p24_p4 = scmp.ge.s32.totalorder %s27_s10, 4   ;;  %s1628_s29 = sld [smem:[#allocation21_spill]] }
 0x703   : > { %s1629_s30 = sld [smem:[#allocation18_spill]]  ;;  %s1630_s9 = sld [smem:[#allocation20_spill]] }
 0x704   : > { %s1631_s27 = smov %s1225_s28  ;;  %26 = sbr.rel (!%p24_p4) target bundleno = 10 (0xa), region = 122 }
 0x707   : > { %s1632_s28 = smov %s1627_s22 }
 0x70b   :  { %799 = vsyncpa [#allocation6], 1 }
 0x70c   :  { %801 = vsyncpa [#allocation6 + $0x1], 1 }
 0x70d   :  { %802 = vsyncpa [#allocation9], 1 }
 0x70e   :  { %804 = vsyncpa [#allocation9 + $0x1], 1 }
 0x70f   :  { %805 = vsyncpa [#allocation7], 1 }
 0x710   :  { %807 = vsyncpa [#allocation7 + $0x1], 1 }

</bundles_post_ra>
